<compile_context>
chip_gen: v7x
topology: tpu7x:2x2x1
jax: 0.10.0
libtpu: 0.0.40
codegen_flags: <defaults>
</compile_context>

<pallas_src>
import numpy as np
import jax
import jax.numpy as jnp
from jax.experimental import pallas as pl
from jax.experimental.pallas import tpu as pltpu


_TI = 256  # inner cumsum block; matches v6e/v7x's native 256x256 MXU tile.
# TODO(synk): on v5e a 128-wide tri would match its native 128x128 MXU tile.


# ----------------------------- Pallas kernel -------------------------------

def _lovasz_chunk_kernel(tri_ref, a_ref, g_ref, es_ref, gs_ref, out_ref):
    """One independent chunk: M = B_pad * n_sub sub-block rows of Ti lanes each.

    tri_ref : (Ti, Ti) bf16  upper-triangular ones (constant block, fetched once)
    a_ref   : (M, 1)   f32   per row: gts - base + pos_base
    g_ref   : (M, 1)   f32   per row: gts - base
    es_ref  : (M, Ti)  f32   errors, globally sorted descending per image
    gs_ref  : (M, Ti)  bf16  0/1 labels in the same order
    out_ref : (M, 1)   f32   per-row partial loss sums
    """
    gs = gs_ref[...]
    es = es_ref[...]
    a = a_ref[...]
    g = g_ref[...]

    # Within-row inclusive cumsum of the 0/1 labels: one MXU-native tri-matmul
    # (exact for 0/1 operands, f32 accumulate).
    local_cum = jnp.dot(gs, tri_ref[...], preferred_element_type=jnp.float32)

    n_rows, n_lanes = es.shape
    lane1 = (jax.lax.broadcasted_iota(jnp.int32, (n_rows, n_lanes), 1) + 1
             ).astype(jnp.float32)

    a_plus = a + lane1                  # gts - base + global position
    inter = g - local_cum               # gts - cumsum(gt)       (>= 0)
    union = a_plus - local_cum          # gts + cumsum(1 - gt)   (>= 1)

    # Lovasz gradient directly (no jaccard differencing, single reciprocal):
    #   label == 1 : grad = 1 / union
    #   label == 0 : grad = inter / (union * (union - 1))
    # The only degenerate case (first element of an all-negative image,
    # union == 1) has grad = 1 and is selected via a + lane1 == 1 (exact ints).
    is_pos = gs > 0.5
    num = jnp.where(is_pos, 1.0, inter)
    den = jnp.where(is_pos, union, union * (union - 1.0))
    first_all_neg = a_plus == 1.0
    num = jnp.where(first_all_neg, 1.0, num)
    den = jnp.where(first_all_neg, 1.0, den)

    grad = num * pl.reciprocal(den, approx=True)
    contrib = jnp.maximum(es, 0.0) * grad
    out_ref[...] = jnp.sum(contrib, axis=1, keepdims=True)


# ------------------------------ Pallas wrapper ------------------------------

def _run_lovasz(tri, a_rows, g_rows, es_rows, gs_rows, n_chunks, m_rows, ti):
    return pl.pallas_call(
        _lovasz_chunk_kernel,
        out_shape=jax.ShapeDtypeStruct((n_chunks * m_rows, 1), jnp.float32),
        grid=(n_chunks,),
        in_specs=[
            pl.BlockSpec((ti, ti), lambda c: (0, 0)),       # tri: constant block
            pl.BlockSpec((m_rows, 1), lambda c: (c, 0)),    # A = gts - base + pos_base
            pl.BlockSpec((m_rows, 1), lambda c: (c, 0)),    # G = gts - base
            pl.BlockSpec((m_rows, ti), lambda c: (c, 0)),   # sorted errors (f32)
            pl.BlockSpec((m_rows, ti), lambda c: (c, 0)),   # sorted labels (bf16)
        ],
        out_specs=pl.BlockSpec((m_rows, 1), lambda c: (c, 0)),
        compiler_params=pltpu.CompilerParams(
            dimension_semantics=("parallel",),  # chunks independent -> 2 TCs on v7x
            vmem_limit_bytes=16 * 1024 * 1024,
        ),
    )(tri, a_rows, g_rows, es_rows, gs_rows)


def _mixed_loss_impl(logits, target):
    B = logits.shape[0]
    x = logits.reshape(B, -1).astype(jnp.float32)
    y = target.reshape(B, -1).astype(jnp.float32)
    N = x.shape[1]

    # hinge errors + per-image positive totals (fused by XLA into the sort producer)
    errors = 1.0 - x * (2.0 * y - 1.0)
    gts = jnp.sum(y, axis=-1, keepdims=True)                        # (B, 1)

    # ---- descending per-image sort as ONE single-operand uint32 sort ---------
    # monotone f32 -> u32 key; complement so ascending u32 == descending error;
    # pack the 0/1 label into the key LSB.
    # TODO(synk): the per-image sort itself has no clean Pallas/TPU kernel
    # equivalent; it stays as an XLA lax.sort.
    bits = jax.lax.bitcast_convert_type(errors, jnp.uint32)
    is_neg = (bits >> jnp.uint32(31)) == jnp.uint32(1)
    key_asc = jnp.where(is_neg, ~bits, bits | jnp.uint32(0x80000000))
    packed = ((~key_asc) & jnp.uint32(0xFFFFFFFE)) | y.astype(jnp.uint32)
    packed = jax.lax.sort(packed, dimension=-1, is_stable=False)
    gs_sorted = (packed & jnp.uint32(1)).astype(jnp.float32)        # labels, sorted
    key_sorted = ~packed
    bits_sorted = jnp.where((key_sorted >> jnp.uint32(31)) == jnp.uint32(1),
                            key_sorted & jnp.uint32(0x7FFFFFFF), ~key_sorted)
    es_sorted = jax.lax.bitcast_convert_type(bits_sorted, jnp.float32)

    # ---- tiling: fold Ti-wide sub-blocks of the sorted axis into sublanes ----
    ti = _TI
    b_pad = (-B) % 8
    bp = B + b_pad
    nb = -(-N // ti)                           # Ti sub-blocks per image (unpadded)
    n_sub = max(1, min(nb, 256 // bp))         # sub-blocks per grid step -> M ~ 256
    n_chunks = -(-nb // n_sub)
    nb_pad = n_chunks * n_sub
    n_total = nb_pad * ti
    m_rows = bp * n_sub

    # padded positions: error = -1 (relu -> 0), label = 0 -> contribute nothing.
    es_p = jnp.pad(es_sorted, ((0, b_pad), (0, n_total - N)), constant_values=-1.0)
    gs_p = jnp.pad(gs_sorted, ((0, b_pad), (0, n_total - N)), constant_values=0.0)
    gts_p = jnp.pad(gts, ((0, b_pad), (0, 0)))

    # sub-block-level exclusive prefix of positives + position offsets (tiny, XLA).
    blk_sum = jnp.sum(gs_p.reshape(bp, nb_pad, ti), axis=-1)        # (bp, nb_pad)
    base = jnp.cumsum(blk_sum, axis=-1) - blk_sum                   # exclusive prefix
    g_row = gts_p - base                                            # gts - base
    a_row = g_row + (jnp.arange(nb_pad, dtype=jnp.float32) * ti)[None, :]

    def fold(v, lanes):  # (bp, nb_pad*lanes) -> (n_chunks*m_rows, lanes)
        v = v.reshape(bp, n_chunks, n_sub, lanes)
        return v.transpose(1, 0, 2, 3).reshape(n_chunks * m_rows, lanes)

    es_rows = fold(es_p, ti)
    gs_rows = fold(gs_p, ti).astype(jnp.bfloat16)
    a_rows = fold(a_row, 1)
    g_rows = fold(g_row, 1)

    # constant (Ti, Ti) upper-triangular ones in bf16 (exact for 0/1 labels).
    r = jax.lax.broadcasted_iota(jnp.int32, (ti, ti), 0)
    c = jax.lax.broadcasted_iota(jnp.int32, (ti, ti), 1)
    tri = (r <= c).astype(jnp.bfloat16)

    per_row = _run_lovasz(tri, a_rows, g_rows, es_rows, gs_rows,
                          n_chunks, m_rows, ti)
    return jnp.sum(per_row) / B


_mixed_loss_jit = jax.jit(_mixed_loss_impl)


class MixedLoss:
    """JAX/Pallas port of PyTorch MixedLoss.forward (lovasz_hinge per_image=True, .mean())."""

    def __init__(self, alpha=10.0, gamma=2.0):
        # alpha / FocalLoss(gamma) are constructed by the PyTorch module but never
        # used by its forward; kept only for constructor parity.
        self.alpha = alpha
        self.gamma = gamma

    def __call__(self, logits, target):
        return _mixed_loss_jit(logits, target)


# ------------------------------ numpy reference ----------------------------

def _reference(logits, target):
    x = np.asarray(logits, np.float64).reshape(logits.shape[0], -1)
    y = np.asarray(target, np.float64).reshape(target.shape[0], -1)
    losses = []
    for b in range(x.shape[0]):
        signs = 2.0 * y[b] - 1.0
        errors = 1.0 - x[b] * signs
        perm = np.argsort(-errors, kind="stable")
        es = errors[perm]
        gs = y[b][perm]
        gts = gs.sum()
        inter = gts - np.cumsum(gs)
        union = gts + np.cumsum(1.0 - gs)
        jac = 1.0 - inter / union
        jac[1:] = jac[1:] - jac[:-1]
        losses.append(np.sum(np.maximum(es, 0.0) * jac))
    return float(np.mean(losses))


if __name__ == "__main__":
    loss_fn = MixedLoss(alpha=10.0, gamma=2.0)
    key = jax.random.PRNGKey(0)
    k1, k2, k3, k4 = jax.random.split(key, 4)

    # case 1: tiny, single chunk (B=2, 1x16x16)
    logits1 = jax.random.normal(k1, (2, 1, 16, 16), dtype=jnp.float32)
    target1 = (jax.random.uniform(k2, (2, 1, 16, 16)) > 0.5).astype(jnp.float32)

    # case 2: multi-chunk path (n_chunks=2, M=256) + an all-negative image
    logits2 = jax.random.normal(k3, (2, 1, 96, 96), dtype=jnp.float32)
    target2 = (jax.random.uniform(k4, (2, 1, 96, 96)) > 0.5).astype(jnp.float32)
    target2 = target2.at[0].set(0.0)

    for logits, target in ((logits1, target1), (logits2, target2)):
        loss = jax.block_until_ready(loss_fn(logits, target))
        ref = _reference(np.array(logits), np.array(target))
        assert np.isfinite(float(loss)), float(loss)
        assert abs(float(loss) - ref) < 2e-3, (float(loss), ref)
    print("KERNEL_OK")
</pallas_src>

<mosaic_0001>
module attributes {stable_mosaic.version = 11 : i64} {
  func.func @_lovasz_chunk_kernel(%arg0: i32, %arg1: memref<256x256xbf16, #tpu.memory_space<vmem>>, %arg2: memref<8x1xf32, #tpu.memory_space<vmem>>, %arg3: memref<8x1xf32, #tpu.memory_space<vmem>>, %arg4: memref<8x256xf32, #tpu.memory_space<vmem>>, %arg5: memref<8x256xbf16, #tpu.memory_space<vmem>>, %arg6: memref<8x1xf32, #tpu.memory_space<vmem>>) attributes {dimension_semantics = [#tpu.dimension_semantics<parallel>], iteration_bounds = array<i64: 1>, scalar_prefetch = 0 : i64, scratch_operands = 0 : i64, tpu.core_type = #tpu.core_type<tc>, window_params = [{pipeline_mode = #tpu.pipeline_mode<synchronous>, transform_indices = @transform_0, window_bounds = array<i64: 256, 256>}, {transform_indices = @transform_1, window_bounds = array<i64: 8, 1>}, {transform_indices = @transform_2, window_bounds = array<i64: 8, 1>}, {transform_indices = @transform_3, window_bounds = array<i64: 8, 256>}, {transform_indices = @transform_4, window_bounds = array<i64: 8, 256>}, {transform_indices = @transform_5, window_bounds = array<i64: 8, 1>}]} {
    %c0 = arith.constant 0 : index
    %c0_0 = arith.constant 0 : index
    %0 = vector.load %arg5[%c0, %c0_0] : memref<8x256xbf16, #tpu.memory_space<vmem>>, vector<8x256xbf16>
    %c0_1 = arith.constant 0 : index
    %c0_2 = arith.constant 0 : index
    %1 = vector.load %arg4[%c0_1, %c0_2] : memref<8x256xf32, #tpu.memory_space<vmem>>, vector<8x256xf32>
    %c0_3 = arith.constant 0 : index
    %c0_4 = arith.constant 0 : index
    %2 = vector.load %arg2[%c0_3, %c0_4] : memref<8x1xf32, #tpu.memory_space<vmem>>, vector<8x1xf32>
    %c0_5 = arith.constant 0 : index
    %c0_6 = arith.constant 0 : index
    %3 = vector.load %arg3[%c0_5, %c0_6] : memref<8x1xf32, #tpu.memory_space<vmem>>, vector<8x1xf32>
    %c0_7 = arith.constant 0 : index
    %c0_8 = arith.constant 0 : index
    %4 = vector.load %arg1[%c0_7, %c0_8] : memref<256x256xbf16, #tpu.memory_space<vmem>>, vector<256x256xbf16>
    %cst = arith.constant dense<0.000000e+00> : vector<8x256xf32>
    %5 = tpu.matmul %0, %4, %cst {dimension_numbers = #tpu.dot_dimension_numbers<[1], [0], [0], [1], [0, 0, 1, 1], [], []>} : vector<8x256xbf16>, vector<256x256xbf16>, vector<8x256xf32> -> vector<8x256xf32>
    %6 = tpu.iota {dimensions = array<i32: 1>} : vector<8x256xi32>
    %c1_i32 = arith.constant 1 : i32
    %7 = vector.broadcast %c1_i32 : i32 to vector<8x256xi32>
    %8 = arith.addi %6, %7 : vector<8x256xi32>
    %9 = arith.sitofp %8 : vector<8x256xi32> to vector<8x256xf32>
    %10 = vector.broadcast %2 : vector<8x1xf32> to vector<8x256xf32>
    %11 = arith.addf %10, %9 : vector<8x256xf32>
    %12 = vector.broadcast %3 : vector<8x1xf32> to vector<8x256xf32>
    %13 = arith.subf %12, %5 : vector<8x256xf32>
    %14 = arith.subf %11, %5 : vector<8x256xf32>
    %cst_9 = arith.constant 5.000000e-01 : bf16
    %15 = vector.broadcast %cst_9 : bf16 to vector<8x256xbf16>
    %16 = arith.cmpf ogt, %0, %15 : vector<8x256xbf16>
    %cst_10 = arith.constant 1.000000e+00 : f32
    %17 = vector.broadcast %cst_10 : f32 to vector<8x256xf32>
    %18 = arith.select %16, %17, %13 : vector<8x256xi1>, vector<8x256xf32>
    %cst_11 = arith.constant 1.000000e+00 : f32
    %19 = vector.broadcast %cst_11 : f32 to vector<8x256xf32>
    %20 = arith.subf %14, %19 : vector<8x256xf32>
    %21 = arith.mulf %14, %20 : vector<8x256xf32>
    %22 = arith.select %16, %14, %21 : vector<8x256xi1>, vector<8x256xf32>
    %cst_12 = arith.constant 1.000000e+00 : f32
    %23 = vector.broadcast %cst_12 : f32 to vector<8x256xf32>
    %24 = arith.cmpf oeq, %11, %23 : vector<8x256xf32>
    %cst_13 = arith.constant 1.000000e+00 : f32
    %25 = vector.broadcast %cst_13 : f32 to vector<8x256xf32>
    %26 = arith.select %24, %25, %18 : vector<8x256xi1>, vector<8x256xf32>
    %cst_14 = arith.constant 1.000000e+00 : f32
    %27 = vector.broadcast %cst_14 : f32 to vector<8x256xf32>
    %28 = arith.select %24, %27, %22 : vector<8x256xi1>, vector<8x256xf32>
    %29 = tpu.reciprocal %28 {approx = true} : vector<8x256xf32> -> vector<8x256xf32>
    %30 = arith.mulf %26, %29 : vector<8x256xf32>
    %cst_15 = arith.constant 0.000000e+00 : f32
    %31 = vector.broadcast %cst_15 : f32 to vector<8x256xf32>
    %32 = arith.maximumf %1, %31 : vector<8x256xf32>
    %33 = arith.mulf %32, %30 : vector<8x256xf32>
    %cst_16 = arith.constant dense<0.000000e+00> : vector<8xf32>
    %34 = vector.multi_reduction <add>, %33, %cst_16 [1] : vector<8x256xf32> to vector<8xf32>
    %35 = vector.shape_cast %34 : vector<8xf32> to vector<8x1xf32>
    %c0_17 = arith.constant 0 : index
    %c0_18 = arith.constant 0 : index
    %36 = vector.load %arg6[%c0_17, %c0_18] : memref<8x1xf32, #tpu.memory_space<vmem>>, vector<8x1xf32>
    tpu.vector_store %arg6[%c0_17, %c0_18], %35 {strides = array<i32>} : memref<8x1xf32, #tpu.memory_space<vmem>>, vector<8x1xf32>,
    return
  }
  func.func @transform_0(%arg0: i32) -> (i32, i32) {
    %c0_i32 = arith.constant 0 : i32
    %c0_i32_0 = arith.constant 0 : i32
    %c0_i32_1 = arith.constant 0 : i32
    return %c0_i32, %c0_i32_0 : i32, i32
  }
  func.func @transform_1(%arg0: i32) -> (i32, i32) {
    %c0_i32 = arith.constant 0 : i32
    %c0_i32_0 = arith.constant 0 : i32
    return %arg0, %c0_i32 : i32, i32
  }
  func.func @transform_2(%arg0: i32) -> (i32, i32) {
    %c0_i32 = arith.constant 0 : i32
    %c0_i32_0 = arith.constant 0 : i32
    return %arg0, %c0_i32 : i32, i32
  }
  func.func @transform_3(%arg0: i32) -> (i32, i32) {
    %c0_i32 = arith.constant 0 : i32
    %c0_i32_0 = arith.constant 0 : i32
    return %arg0, %c0_i32 : i32, i32
  }
  func.func @transform_4(%arg0: i32) -> (i32, i32) {
    %c0_i32 = arith.constant 0 : i32
    %c0_i32_0 = arith.constant 0 : i32
    return %arg0, %c0_i32 : i32, i32
  }
  func.func @transform_5(%arg0: i32) -> (i32, i32) {
    %c0_i32 = arith.constant 0 : i32
    %c0_i32_0 = arith.constant 0 : i32
    return %arg0, %c0_i32 : i32, i32
  }
}

</mosaic_0001>

<bundles_post_ra>
// kernel: _mixed_loss_impl.1
= control target key start
LH: loop header
LB: loop body
LE: loop exit
PB: predicated region body
PF: predicated region fallthrough
CT: control target
= control target key end

     0   :  { %v420_v1 = vmov 0   ;;  %v268_v39 = vlaneseq  ;;  %vm322_vm5 = vcmask 7168   ;;  %s581_s0 = inlined_call_operand.vmem [shape: bf16[256,256], index: 0, kind: input, shape index: {}]   ;;  %s582_s4 = inlined_call_operand.vmem [shape: bf16[8,256], index: 4, kind: input, shape index: {}]   ;;  %s583_s1 = inlined_call_operand.vmem [shape: f32[8,1], index: 1, kind: input, shape index: {}, may-alias: {1,2}]   ;;  %s584_s2 = inlined_call_operand.vmem [shape: f32[8,1], index: 2, kind: input, shape index: {}, may-alias: {1,2}]   ;;  %s585_s3 = inlined_call_operand.vmem [shape: f32[8,256], index: 3, kind: input, shape index: {}]   ;;  %s586_s5 = inlined_call_operand.vmem [shape: f32[8,1], index: 5, kind: output, shape index: {}]  }
   0x1   :  { %v366_v0 = vld [vmem:[%s581_s0 + $0x4] ss:$8 sps:$4 sm:$0xff]   ;;  %365 = vset.pattern.permute.xlu0 %v420_v1  ;;  %v368_v2 = vld [vmem:[%s581_s0] ss:$8 sps:$4 sm:$0xff]   ;;  %v369_v3 = vld [vmem:[%s581_s0 + $0x14] ss:$8 sps:$4 sm:$0xff]  }
   0x2   :  { %227 = vmatprep.subr.bf16.mxu0 %v366_v0  ;;  %v371_v4 = vld [vmem:[%s581_s0 + $0x10] ss:$8 sps:$4 sm:$0xff]   ;;  %v372_v5 = vld [vmem:[%s581_s0 + $0x24] ss:$8 sps:$4 sm:$0xff]   ;;  %v374_v6 = vld [vmem:[%s581_s0 + $0x20] ss:$8 sps:$4 sm:$0xff]  }
   0x3   :  { %228 = vmatpush1.bf16.msra.mxu0 %v368_v2  ;;  %v375_v7 = vld [vmem:[%s581_s0 + $0x34] ss:$8 sps:$4 sm:$0xff]   ;;  %v377_v8 = vld [vmem:[%s581_s0 + $0x30] ss:$8 sps:$4 sm:$0xff]   ;;  %v378_v9 = vld [vmem:[%s581_s0 + $0x44] ss:$8 sps:$4 sm:$0xff]  }
   0x4   :  { %229 = vmatprep.subr.bf16.mxu0 %v369_v3  ;;  %v380_v10 = vld [vmem:[%s581_s0 + $0x40] ss:$8 sps:$4 sm:$0xff]   ;;  %v381_v11 = vld [vmem:[%s581_s0 + $0x54] ss:$8 sps:$4 sm:$0xff]   ;;  %v383_v12 = vld [vmem:[%s581_s0 + $0x50] ss:$8 sps:$4 sm:$0xff]  }
   0x5   :  { %v384_v13 = vld [vmem:[%s581_s0 + $0x64] ss:$8 sps:$4 sm:$0xff]   ;;  %v386_v17 = vld [vmem:[%s581_s0 + $0x60] ss:$8 sps:$4 sm:$0xff]   ;;  %v387_v20 = vld [vmem:[%s581_s0 + $0x74] ss:$8 sps:$4 sm:$0xff]  }
   0x6   :  { %v23_v14 = vld [vmem:[%s582_s4] sm:$0xff]  ;;  %v389_v21 = vld [vmem:[%s581_s0 + $0x70] ss:$8 sps:$4 sm:$0xff]   ;;  %v393_v24 = vld [vmem:[%s581_s0 + $0x94] ss:$8 sps:$4 sm:$0xff]   ;;  %v269_v40 = vand.u32 127, %v268_v39 }
   0x7   :  { %230 = vmatpush1.bf16.msra.mxu0 %v371_v4  ;;  %v26_v15 = vld [vmem:[%s583_s1] sm:$0xff]  ;;  %v329_v16 = vcombine.high %v23_v14, %v23_v14  ;;  %vm291_vm0 = vcmp.gt.bf16.partialorder %v23_v14, 1056980736  ;;  %v395_v25 = vld [vmem:[%s581_s0 + $0x90] ss:$8 sps:$4 sm:$0xff]   ;;  %v328_v38 = vcombine.low %v23_v14, %v23_v14 }
   0x8   :  { %231 = vmatprep.subr.bf16.mxu0 %v372_v5  ;;  %277 = vperm.xlu0 %365, %v26_v15   ;;  %v292_v18 = vsel %vm291_vm0, 65537, %v420_v1  ;;  %v27_v19 = vld [vmem:[%s584_s2] sm:$0xff]  ;;  %v399_v28 = vld [vmem:[%s581_s0 + $0xb4] ss:$8 sps:$4 sm:$0xff]   ;;  %v401_v29 = vld [vmem:[%s581_s0 + $0xb0] ss:$8 sps:$4 sm:$0xff]  }
   0x9   :  { %259 = vmatprep.mubr.bf16.mxu0 %v329_v16  ;;  %v390_v22 = vld [vmem:[%s581_s0 + $0x84] ss:$8 sps:$4 sm:$0xff]   ;;  %v392_v23 = vld [vmem:[%s581_s0 + $0x80] ss:$8 sps:$4 sm:$0xff]   ;;  %v405_v32 = vld [vmem:[%s581_s0 + $0xd4] ss:$8 sps:$4 sm:$0xff]   ;;  %v293_v47 = vunpack.c.l.b16 %v292_v18  ;;  %v294_v48 = vunpack.c.h.b16 %v292_v18 }
   0xa   :  { %v396_v26 = vld [vmem:[%s581_s0 + $0xa4] ss:$8 sps:$4 sm:$0xff]   ;;  %v398_v27 = vld [vmem:[%s581_s0 + $0xa0] ss:$8 sps:$4 sm:$0xff]   ;;  %v407_v33 = vld [vmem:[%s581_s0 + $0xd0] ss:$8 sps:$4 sm:$0xff]  }
   0xb   :  { %232 = vmatpush1.bf16.msra.mxu0 %v374_v6  ;;  %v402_v30 = vld [vmem:[%s581_s0 + $0xc4] ss:$8 sps:$4 sm:$0xff]   ;;  %v404_v31 = vld [vmem:[%s581_s0 + $0xc0] ss:$8 sps:$4 sm:$0xff]   ;;  %v411_v36 = vld [vmem:[%s581_s0 + $0xf4] ss:$8 sps:$4 sm:$0xff]  }
   0xc   :  { %233 = vmatprep.subr.bf16.mxu0 %v375_v7  ;;  %284 = vperm.xlu0 %365, %v27_v19   ;;  %v408_v34 = vld [vmem:[%s581_s0 + $0xe4] ss:$8 sps:$4 sm:$0xff]   ;;  %v410_v35 = vld [vmem:[%s581_s0 + $0xe0] ss:$8 sps:$4 sm:$0xff]   ;;  %v413_v37 = vld [vmem:[%s581_s0 + $0xf0] ss:$8 sps:$4 sm:$0xff]  }
   0xd   :  { %v270_v41 = vadd.s32 128, %v269_v40  ;;  %v271_v42 = vadd.s32 1, %v269_v40  ;;  %vm556_vm1 = vcmp.ne.s32.totalorder %v293_v47, 0  ;;  %vm560_vm2 = vcmp.ne.s32.totalorder %v294_v48, 0 }
   0xf   :  { %234 = vmatpush1.bf16.msra.mxu0 %v377_v8  ;;  %v272_v43 = vadd.s32 1, %v270_v41  ;;  %v273_v45 = vcvt.s32.f32 %v271_v42  ;;  %v24_v8 = vld [vmem:[%s585_s3] sm:$0xff] }
  0x10   :  { %235 = vmatprep.subr.bf16.mxu0 %v378_v9  ;;  %v25_v9 = vld [vmem:[%s585_s3 + $0x8] sm:$0xff] }
  0x11   :  { %v274_v46 = vcvt.s32.f32 %v272_v43 }
  0x13   :  { %236 = vmatpush1.bf16.msra.mxu0 %v380_v10  ;;  %v315_v10 = vmax.f32 %v24_v8, 0.0 }
  0x14   :  { %237 = vmatprep.subr.bf16.mxu0 %v381_v11 }
  0x17   :  { %238 = vmatpush1.bf16.msra.mxu0 %v383_v12 }
  0x18   :  { %239 = vmatprep.subr.bf16.mxu0 %v384_v13  ;;  %v316_v13 = vmax.f32 %v25_v9, 0.0 }
  0x1b   :  { %240 = vmatpush1.bf16.msra.mxu0 %v386_v17 }
  0x1c   :  { %241 = vmatprep.subr.bf16.mxu0 %v387_v20 }
  0x1f   :  { %242 = vmatpush1.bf16.msra.mxu0 %v389_v21 }
  0x20   :  { %243 = vmatprep.subr.bf16.mxu0 %v390_v22 }
  0x23   :  { %244 = vmatpush1.bf16.msra.mxu0 %v392_v23 }
  0x24   :  { %245 = vmatprep.subr.bf16.mxu0 %v393_v24 }
  0x27   :  { %246 = vmatpush1.bf16.msra.mxu0 %v395_v25 }
  0x28   :  { %247 = vmatprep.subr.bf16.mxu0 %v396_v26 }
  0x2b   :  { %248 = vmatpush1.bf16.msra.mxu0 %v398_v27 }
  0x2c   :  { %249 = vmatprep.subr.bf16.mxu0 %v399_v28 }
  0x2f   :  { %250 = vmatpush1.bf16.msra.mxu0 %v401_v29 }
  0x30   :  { %251 = vmatprep.subr.bf16.mxu0 %v402_v30 }
  0x33   :  { %252 = vmatpush1.bf16.msra.mxu0 %v404_v31 }
  0x34   :  { %253 = vmatprep.subr.bf16.mxu0 %v405_v32 }
  0x37   :  { %254 = vmatpush1.bf16.msra.mxu0 %v407_v33 }
  0x38   :  { %255 = vmatprep.subr.bf16.mxu0 %v408_v34 }
  0x3b   :  { %256 = vmatpush1.bf16.msra.mxu0 %v410_v35 }
  0x3c   :  { %257 = vmatprep.subr.bf16.mxu0 %v411_v36 }
  0x3f   :  { %258 = vmatpush1.bf16.msra.mxu0 %v413_v37 }
  0x42   :  { %260 = vmatmul.mubr.bf16.vlgmr.msra.gmra.mrb[0].mxu0 %v328_v38 }
  0x87   :  { %v278_v44 = vpop.permute.xlu0 %277 }
  0x88   :  { %v280_v49 = vadd.f32 %v278_v44, %v273_v45  ;;  %v281_v50 = vadd.f32 %v278_v44, %v274_v46 }
  0x8a   :  { %vm305_vm3 = vcmp.eq.f32.partialorder %v280_v49, 1.0  ;;  %vm306_vm4 = vcmp.eq.f32.partialorder %v281_v50, 1.0 }
  0x8b   :  { %v285_v51 = vpop.permute.xlu0 %284 }
 0x115   :  { %v261_v53 = vpop.f32.mrb[0].mxu0 }
 0x116   :  { %v287_v55 = vsub.f32 %v285_v51, %v261_v53  ;;  %v289_v56 = vsub.f32 %v280_v49, %v261_v53  ;;  %v263_v57 = vpop.f32.mrb[1].mxu0 }
 0x117   :  { %v288_v58 = vsub.f32 %v285_v51, %v263_v57  ;;  %v290_v59 = vsub.f32 %v281_v50, %v263_v57  ;;  %v265_v60 = vpop.f32.mrb[2].mxu0 }
 0x118   :  { %v297_v61 = vsel %vm556_vm1, 1.0, %v287_v55  ;;  %v362_v62 = vadd.f32 -1.0, %v289_v56  ;;  %v266_v63 = vpop.f32.mrb[3].mxu0 }
 0x119   :  { %v298_v0 = vsel %vm560_vm2, 1.0, %v288_v58  ;;  %v363_v1 = vadd.f32 -1.0, %v290_v59  ;;  %v307_v12 = vsel %vm305_vm3, 1.0, %v297_v61 }
 0x11a   :  { %v301_v2 = vmul.f32 %v362_v62, %v289_v56  ;;  %v308_v15 = vsel %vm306_vm4, 1.0, %v298_v0 }
 0x11b   :  { %v302_v3 = vmul.f32 %v363_v1, %v290_v59 }
 0x11c   :  { %v303_v4 = vsel %vm556_vm1, %v289_v56, %v301_v2 }
 0x11d   :  { %v309_v5 = vsel %vm305_vm3, 1.0, %v303_v4  ;;  %v304_v6 = vsel %vm560_vm2, %v290_v59, %v302_v3 }
 0x11e   :  { %416 = vrcp.f32 %v309_v5  ;;  %v310_v7 = vsel %vm306_vm4, 1.0, %v304_v6 }
 0x11f   :  { %418 = vrcp.f32 %v310_v7 }
 0x128   :  { %v417_v11 = vpop.eup %416 }
 0x129   :  { %v419_v14 = vpop.eup %418  ;;  %v313_v16 = vmul.f32 %v417_v11, %v307_v12 }
 0x12a   :  { %v314_v17 = vmul.f32 %v419_v14, %v308_v15 }
 0x12b   :  { %v317_v18 = vmul.f32 %v315_v10, %v313_v16 }
 0x12c   :  { %v318_v19 = vmul.f32 %v316_v13, %v314_v17 }
 0x12e   :  { %v319_v20 = vadd.f32 %v318_v19, %v317_v18 }
 0x130   :  { %320 = vadd.xlane.f32.xlu1 %v319_v20 }
 0x1bd   :  { %v321_v21 = vpop.xlane.xlu1 %320 }
 0x1be   :  { %323 = vst.msk [vmem:[%s586_s5] sm:$0xff] %vm322_vm5, %v321_v21 }

</bundles_post_ra>
